<compile_context>
chip_gen: v7x
topology: tpu7x:2x2x1
jax: 0.10.0
libtpu: 0.0.40
codegen_flags: <defaults>
</compile_context>

<pallas_src>
import functools

import jax
import jax.numpy as jnp
from jax.experimental import pallas as pl
from jax.experimental.pallas import tpu as pltpu


def _bn_relu_epilogue(acc, gb_ref, o_ref, *, eps, inv_n):
    """BatchNorm (batch stats, biased var) + ReLU over a resident (N, tn) fp32 block."""
    gb = gb_ref[...]                                   # (2, tn) fp32: [gamma; beta]
    gamma = gb[0:1, :]
    beta = gb[1:2, :]
    # Pass 1: both column sums from a single read of acc.
    s1 = jnp.sum(acc, axis=0, keepdims=True)
    s2 = jnp.sum(acc * acc, axis=0, keepdims=True)
    mean = s1 * inv_n
    var = jnp.maximum(s2 * inv_n - mean * mean, 0.0)   # clamp fp32 cancellation
    scale = jax.lax.rsqrt(var + eps) * gamma           # (1, tn)
    shift = beta - mean * scale                        # (1, tn)
    # Pass 2: fused normalize + affine + ReLU + store.
    o_ref[...] = jnp.maximum(acc * scale + shift, 0.0).astype(o_ref.dtype)


def _dnr_kernel_multi_k(x_ref, w_ref, gb_ref, o_ref, acc_ref, *, eps, inv_n):
    k = pl.program_id(1)

    @pl.when(k == 0)
    def _():
        acc_ref[...] = jnp.zeros_like(acc_ref)

    # MXU matmul: bf16 x bf16 -> fp32 accumulate into the resident scratch.
    acc_ref[...] += jnp.dot(x_ref[...], w_ref[...],
                            preferred_element_type=jnp.float32)

    @pl.when(k == pl.num_programs(1) - 1)
    def _():
        _bn_relu_epilogue(acc_ref[...], gb_ref, o_ref, eps=eps, inv_n=inv_n)


def _dnr_kernel_single_k(x_ref, w_ref, gb_ref, o_ref, *, eps, inv_n):
    # Full K resident: no accumulator scratch round-trip.
    acc = jnp.dot(x_ref[...], w_ref[...], preferred_element_type=jnp.float32)
    _bn_relu_epilogue(acc, gb_ref, o_ref, eps=eps, inv_n=inv_n)


def _round_up(v, m):
    return (v + m - 1) // m * m


def _vmem_budget_bytes():
    try:
        cap = int(getattr(pltpu.get_tpu_info(), "vmem_capacity_bytes", 64 << 20))
    except Exception:
        cap = 64 << 20                       # v7x per-TC VMEM: tightest generation
    return max(16 << 20, min(int(cap * 0.7), 96 << 20))


def _footprint_bytes(n, tk, tn, out_bytes):
    x_b = 2 * n * tk * 2                     # bf16 x tile, double-buffered
    w_b = 2 * tk * tn * 2                    # bf16 W^T tile, double-buffered
    gb_b = 2 * 8 * tn * 4                    # (2, tn) pads to 8 sublanes, double-buffered
    o_b = 2 * n * tn * out_bytes             # output tile, double-buffered
    acc_b = n * tn * 4                       # fp32 accumulator scratch
    epi_b = n * tn * 4                       # epilogue temporaries headroom
    return x_b + w_b + gb_b + o_b + acc_b + epi_b + (2 << 20)


def _select_tiles(n, in_feats, out_feats, out_bytes, budget):
    # tn: lane-dense 256 only when it still yields >=2 "parallel" j tiles
    # (v7x megacore sharding); otherwise 128.
    if out_feats > 128 and _round_up(out_feats, 256) // 256 >= 2:
        tn_list = (256, 128)
    else:
        tn_list = (128,)
    in_p128 = _round_up(in_feats, 128)
    # Prefer full-K residency (x DMA'd once), then step down.
    tk_list = [in_p128] + [t for t in (1024, 512, 256, 128) if t < in_p128]
    for tn in tn_list:
        for tk in tk_list:
            if _footprint_bytes(n, tk, tn, out_bytes) <= budget:
                return tn, tk
    # TODO(synk): batch-tiled fallback for very large N; take smallest tiles.
    return 128, 128


def dense_norm_relu(x, weight_t, bias, gamma, beta, eps=1e-5,
                    mxu_dtype=jnp.bfloat16, tn=None, tk=None):
    """x: [N, in]; weight_t: [in, out]; bias/gamma/beta: [out].

    `bias` is accepted for interface parity with nn.Linear but is not fed to the
    kernel: train-mode BatchNorm's batch-mean subtraction cancels it exactly.
    `tn`/`tk` override the auto-selected tiles (testing / tuning only).
    """
    del bias  # cancels under BatchNorm (batch-stats) mean subtraction
    n, in_feats = x.shape
    k_in, out_feats = weight_t.shape
    assert k_in == in_feats

    out_dtype = x.dtype
    out_bytes = jnp.dtype(out_dtype).itemsize
    budget = _vmem_budget_bytes()
    sel_tn, sel_tk = _select_tiles(n, in_feats, out_feats, out_bytes, budget)
    tn = sel_tn if tn is None else tn
    tk = sel_tk if tk is None else tk
    in_p = _round_up(in_feats, tk)
    out_p = _round_up(out_feats, tn)

    # Pad feature dims only; the batch dim stays exact so the BN statistics are
    # the true batch statistics.  Padded output columns have acc == 0 and
    # gamma == 0 -> output 0; they are sliced off below.
    x_p = jnp.pad(x, ((0, 0), (0, in_p - in_feats))).astype(mxu_dtype)
    w_p = jnp.pad(weight_t,
                  ((0, in_p - in_feats), (0, out_p - out_feats))).astype(mxu_dtype)
    gb_p = jnp.stack([
        jnp.pad(gamma.astype(jnp.float32), (0, out_p - out_feats)),
        jnp.pad(beta.astype(jnp.float32), (0, out_p - out_feats)),
    ])                                                  # (2, out_p) fp32

    jn, kn = out_p // tn, in_p // tk
    eps = float(eps)
    inv_n = 1.0 / float(n)

    if kn == 1:
        # Full K resident: x's block index is constant across j, so the pipeline
        # fetches it once and never re-DMAs it.
        kernel = functools.partial(_dnr_kernel_single_k, eps=eps, inv_n=inv_n)
        grid_spec = pltpu.PrefetchScalarGridSpec(
            num_scalar_prefetch=0,
            grid=(jn,),
            in_specs=[
                pl.BlockSpec((n, in_p), lambda j: (0, 0)),   # x: fully resident
                pl.BlockSpec((in_p, tn), lambda j: (0, j)),  # W^T column tile
                pl.BlockSpec((2, tn), lambda j: (0, j)),     # [gamma; beta]
            ],
            out_specs=pl.BlockSpec((n, tn), lambda j: (0, j)),
        )
        semantics = ("parallel",)
    else:
        kernel = functools.partial(_dnr_kernel_multi_k, eps=eps, inv_n=inv_n)
        grid_spec = pltpu.PrefetchScalarGridSpec(
            num_scalar_prefetch=0,
            grid=(jn, kn),
            in_specs=[
                pl.BlockSpec((n, tk), lambda j, k: (0, k)),   # x: full batch, K tile
                pl.BlockSpec((tk, tn), lambda j, k: (k, j)),  # W^T tile
                pl.BlockSpec((2, tn), lambda j, k: (0, j)),   # [gamma; beta]
            ],
            out_specs=pl.BlockSpec((n, tn), lambda j, k: (0, j)),
            scratch_shapes=[pltpu.VMEM((n, tn), jnp.float32)],
        )
        semantics = ("parallel", "arbitrary")

    out_padded = pl.pallas_call(
        kernel,
        out_shape=jax.ShapeDtypeStruct((n, out_p), out_dtype),
        grid_spec=grid_spec,
        compiler_params=pltpu.CompilerParams(
            dimension_semantics=semantics,
            vmem_limit_bytes=budget,
        ),
    )(x_p, w_p, gb_p)

    return out_padded[:, :out_feats]


def _reference(x, weight_t, bias, gamma, beta, eps=1e-5):
    # Plain-JAX reference including the bias (like the PyTorch module); it must
    # cancel under the BN mean subtraction.  Same bf16 input quantization and
    # fp32 accumulation as the kernel.
    xb = x.astype(jnp.bfloat16).astype(jnp.float32)
    wb = weight_t.astype(jnp.bfloat16).astype(jnp.float32)
    y = jnp.dot(xb, wb, precision=jax.lax.Precision.HIGHEST) + bias
    m = y.mean(axis=0, keepdims=True)
    v = ((y - m) ** 2).mean(axis=0, keepdims=True)
    return jnp.maximum((y - m) * jax.lax.rsqrt(v + eps) * gamma + beta, 0.0)


if __name__ == "__main__":
    key = jax.random.PRNGKey(0)

    def make_case(k, n, in_feats, out_feats):
        k_x, k_w, k_b = jax.random.split(k, 3)
        x = jax.random.normal(k_x, (n, in_feats), dtype=jnp.float32)
        # Mimic nn.Linear init: uniform(-1/sqrt(in), 1/sqrt(in)); BN gamma=1, beta=0.
        bound = float(in_feats) ** -0.5
        weight = jax.random.uniform(k_w, (out_feats, in_feats), jnp.float32,
                                    -bound, bound)       # PyTorch layout [out, in]
        bias = jax.random.uniform(k_b, (out_feats,), jnp.float32, -bound, bound)
        gamma = jnp.ones((out_feats,), jnp.float32)
        beta = jnp.zeros((out_feats,), jnp.float32)
        return x, weight, bias, gamma, beta

    k1, k2 = jax.random.split(key)

    # Case 1: module-sized shapes -> single-K kernel (x fully resident).
    x, w, b, g, be = make_case(k1, 8, 32, 16)
    out = jax.block_until_ready(dense_norm_relu(x, w.T, b, g, be))
    ref = _reference(x, w.T, b, g, be)
    assert out.shape == (8, 16)
    assert jnp.allclose(out, ref, atol=2e-3, rtol=2e-3), "case 1 mismatch vs reference"

    # Case 2: forced small tk -> exercises the multi-K accumulator kernel and a
    # 2-tile "parallel" j axis (the v7x megacore path).
    x, w, b, g, be = make_case(k2, 8, 256, 192)
    out = jax.block_until_ready(dense_norm_relu(x, w.T, b, g, be, tk=128))
    ref = _reference(x, w.T, b, g, be)
    assert out.shape == (8, 192)
    assert jnp.allclose(out, ref, atol=2e-3, rtol=2e-3), "case 2 mismatch vs reference"

    print("KERNEL_OK")
</pallas_src>

<mosaic_0001>
module attributes {stable_mosaic.version = 11 : i64} {
  func.func @_dnr_kernel_single_k(%arg0: i32, %arg1: memref<8x128xbf16, #tpu.memory_space<vmem>>, %arg2: memref<128x128xbf16, #tpu.memory_space<vmem>>, %arg3: memref<2x128xf32, #tpu.memory_space<vmem>>, %arg4: memref<8x128xf32, #tpu.memory_space<vmem>>) attributes {dimension_semantics = [#tpu.dimension_semantics<parallel>], iteration_bounds = array<i64: 1>, scalar_prefetch = 0 : i64, scratch_operands = 0 : i64, tpu.core_type = #tpu.core_type<tc>, window_params = [{pipeline_mode = #tpu.pipeline_mode<synchronous>, transform_indices = @transform_0, window_bounds = array<i64: 8, 128>}, {transform_indices = @transform_1, window_bounds = array<i64: 128, 128>}, {transform_indices = @transform_2, window_bounds = array<i64: 2, 128>}, {transform_indices = @transform_3, window_bounds = array<i64: 8, 128>}]} {
    %c0 = arith.constant 0 : index
    %c0_0 = arith.constant 0 : index
    %0 = vector.load %arg1[%c0, %c0_0] : memref<8x128xbf16, #tpu.memory_space<vmem>>, vector<8x128xbf16>
    %c0_1 = arith.constant 0 : index
    %c0_2 = arith.constant 0 : index
    %1 = vector.load %arg2[%c0_1, %c0_2] : memref<128x128xbf16, #tpu.memory_space<vmem>>, vector<128x128xbf16>
    %cst = arith.constant dense<0.000000e+00> : vector<8x128xf32>
    %2 = tpu.matmul %0, %1, %cst {dimension_numbers = #tpu.dot_dimension_numbers<[1], [0], [0], [1], [0, 0, 1, 1], [], []>} : vector<8x128xbf16>, vector<128x128xbf16>, vector<8x128xf32> -> vector<8x128xf32>
    %c0_3 = arith.constant 0 : index
    %c0_4 = arith.constant 0 : index
    %3 = vector.load %arg3[%c0_3, %c0_4] : memref<2x128xf32, #tpu.memory_space<vmem>>, vector<2x128xf32>
    %4 = vector.extract_strided_slice %3 {offsets = [0, 0], sizes = [1, 128], strides = [1, 1]} : vector<2x128xf32> to vector<1x128xf32>
    %5 = vector.extract_strided_slice %3 {offsets = [1, 0], sizes = [1, 128], strides = [1, 1]} : vector<2x128xf32> to vector<1x128xf32>
    %cst_5 = arith.constant dense<0.000000e+00> : vector<128xf32>
    %6 = vector.multi_reduction <add>, %2, %cst_5 [0] : vector<8x128xf32> to vector<128xf32>
    %7 = vector.shape_cast %6 : vector<128xf32> to vector<1x128xf32>
    %8 = arith.mulf %2, %2 : vector<8x128xf32>
    %cst_6 = arith.constant dense<0.000000e+00> : vector<128xf32>
    %9 = vector.multi_reduction <add>, %8, %cst_6 [0] : vector<8x128xf32> to vector<128xf32>
    %10 = vector.shape_cast %9 : vector<128xf32> to vector<1x128xf32>
    %cst_7 = arith.constant 1.250000e-01 : f32
    %11 = vector.broadcast %cst_7 : f32 to vector<1x128xf32>
    %12 = arith.mulf %7, %11 : vector<1x128xf32>
    %cst_8 = arith.constant 1.250000e-01 : f32
    %13 = vector.broadcast %cst_8 : f32 to vector<1x128xf32>
    %14 = arith.mulf %10, %13 : vector<1x128xf32>
    %15 = arith.mulf %12, %12 : vector<1x128xf32>
    %16 = arith.subf %14, %15 : vector<1x128xf32>
    %cst_9 = arith.constant 0.000000e+00 : f32
    %17 = vector.broadcast %cst_9 : f32 to vector<1x128xf32>
    %18 = arith.maximumf %16, %17 : vector<1x128xf32>
    %cst_10 = arith.constant 9.99999974E-6 : f32
    %19 = vector.broadcast %cst_10 : f32 to vector<1x128xf32>
    %20 = arith.addf %18, %19 : vector<1x128xf32>
    %21 = math.rsqrt %20 : vector<1x128xf32>
    %22 = arith.mulf %21, %4 : vector<1x128xf32>
    %23 = arith.mulf %12, %22 : vector<1x128xf32>
    %24 = arith.subf %5, %23 : vector<1x128xf32>
    %25 = vector.broadcast %22 : vector<1x128xf32> to vector<8x128xf32>
    %26 = arith.mulf %2, %25 : vector<8x128xf32>
    %27 = vector.broadcast %24 : vector<1x128xf32> to vector<8x128xf32>
    %28 = arith.addf %26, %27 : vector<8x128xf32>
    %cst_11 = arith.constant 0.000000e+00 : f32
    %29 = vector.broadcast %cst_11 : f32 to vector<8x128xf32>
    %30 = arith.maximumf %28, %29 : vector<8x128xf32>
    %c0_12 = arith.constant 0 : index
    %c0_13 = arith.constant 0 : index
    %31 = vector.load %arg4[%c0_12, %c0_13] : memref<8x128xf32, #tpu.memory_space<vmem>>, vector<8x128xf32>
    tpu.vector_store %arg4[%c0_12, %c0_13], %30 {strides = array<i32>} : memref<8x128xf32, #tpu.memory_space<vmem>>, vector<8x128xf32>,
    return
  }
  func.func @transform_0(%arg0: i32) -> (i32, i32) {
    %c0_i32 = arith.constant 0 : i32
    %c0_i32_0 = arith.constant 0 : i32
    %c0_i32_1 = arith.constant 0 : i32
    return %c0_i32, %c0_i32_0 : i32, i32
  }
  func.func @transform_1(%arg0: i32) -> (i32, i32) {
    %c0_i32 = arith.constant 0 : i32
    %c0_i32_0 = arith.constant 0 : i32
    return %c0_i32, %arg0 : i32, i32
  }
  func.func @transform_2(%arg0: i32) -> (i32, i32) {
    %c0_i32 = arith.constant 0 : i32
    %c0_i32_0 = arith.constant 0 : i32
    return %c0_i32, %arg0 : i32, i32
  }
  func.func @transform_3(%arg0: i32) -> (i32, i32) {
    %c0_i32 = arith.constant 0 : i32
    %c0_i32_0 = arith.constant 0 : i32
    return %c0_i32, %arg0 : i32, i32
  }
}

</mosaic_0001>

<bundles_post_ra>
// kernel: tpu_custom_call.1
= control target key start
LH: loop header
LB: loop body
LE: loop exit
PB: predicated region body
PF: predicated region fallthrough
CT: control target
= control target key end

     0   :  { %8 = vsyncpa [#allocation3], 0  ;;  %s401_s0 = inlined_call_operand.hbm [shape: bf16[8,128], index: 0, kind: input, shape index: {}]   ;;  %s402_s1 = inlined_call_operand.hbm [shape: bf16[128,128], index: 1, kind: input, shape index: {}]   ;;  %s403_s2 = inlined_call_operand.vmem [shape: f32[2,128], index: 2, kind: input, shape index: {}]   ;;  %s404_s3 = inlined_call_operand.hbm [shape: f32[8,128], index: 3, kind: output, shape index: {}]  }
   0x1   :  { %9 = vsyncpa [#allocation6], 0 }
   0x2   :  { %10 = vsyncpa [#allocation4], 0  ;;  %s328_s12 = smov [#allocation2]   ;;  %s329_s14 = smov [#allocation5]  }
   0x3   :  { %s17_s13 = sshll.u32 %s328_s12, 4  ;;  %s26_s15 = sshll.u32 %s329_s14, 4  ;;  %s18_s13 = int_to_ptr.vmem [resolvable:$true] %s17_s13  ;;  %s355_s15 = int_to_ptr.vmem [resolvable:$true] %s26_s15 }
   0x4   :  { %s256_s18 = scalar_lea.hbm %s401_s0, 64 }
   0x5   :  { %p257_p0 = scmp.ne.s32.totalorder %s401_s0, %s256_s18  ;;  %p260_p1 = scmp.lt.u32.totalorder %s256_s18, %s401_s0 }
   0x7   :  { %p262_p2 = pnand %p260_p1, %p257_p0 }
   0x9   :  { %265 = shalt.err (!%p262_p2)
}
   0xa   :  { %s266_s23 = scalar_lea.vmem %s18_s13, 64  ;;  %p271_p4 = scmp.lt.s32.totalorder %s18_s13, %s18_s13 }
   0xb   :  { %p267_p3 = scmp.ne.s32.totalorder %s18_s13, %s266_s23  ;;  %p272_p5 = scmp.lt.s32.totalorder %s266_s23, %s266_s23 }
   0xd   :  { %p273_p6 = por %p272_p5, %p271_p4 }
   0xf   :  { %p274_p7 = pnand %p273_p6, %p267_p3 }
  0x11   :  { %277 = shalt.err (!%p274_p7)
}
  0x12   :  { %20 = dma.hbm_to_vmem [thread:$0]  %s401_s0, 64, %s18_s13, [#allocation3]  }
  0x13   :  { %s278_s28 = scalar_lea.hbm %s402_s1, 1024 }
  0x14   :  { %p279_p8 = scmp.ne.s32.totalorder %s402_s1, %s278_s28  ;;  %p282_p9 = scmp.lt.u32.totalorder %s278_s28, %s402_s1 }
  0x16   :  { %p284_p10 = pnand %p282_p9, %p279_p8 }
  0x18   :  { %287 = shalt.err (!%p284_p10)
}
  0x19   :  { %s288_s6 = scalar_lea.vmem %s355_s15, 1024  ;;  %p293_p12 = scmp.lt.s32.totalorder %s355_s15, %s355_s15 }
  0x1a   :  { %p289_p11 = scmp.ne.s32.totalorder %s355_s15, %s288_s6  ;;  %p294_p13 = scmp.lt.s32.totalorder %s288_s6, %s288_s6 }
  0x1c   :  { %p295_p0 = por %p294_p13, %p293_p12 }
  0x1e   :  { %p296_p1 = pnand %p295_p0, %p289_p11 }
  0x20   :  { %299 = shalt.err (!%p296_p1)
}
  0x21   :  { %s330_s0 = smov 64   ;;  %s331_s7 = smov 4  }
  0x22   :  { %32 = dma.hbm_to_vmem [thread:$0]  %s402_s1, 1024, %s355_s15, [#allocation6], %s330_s0, %s330_s0, %s331_s7  }
  0x23   :  { %322 = dma.done.wait [#allocation3], 64  }
  0x24   :  { %323 = vsyncadd [#allocation3], 4294967232 }
  0x25   :  { %324 = dma.done.wait [#allocation6], 1024  }
  0x26   :  { %325 = vsyncadd [#allocation6], 4294966272  ;;  %v332_v0 = vmov 0.0   ;;  %vm333_vm0 = vmmov 0   ;;  %v246_v1 = vld [vmem:[#allocation5] sm:$0xff]   ;;  %v247_v2 = vld [vmem:[#allocation5 + $0x8] sm:$0xff]   ;;  %v174_v33 = vlaneseq }
  0x27   :  { %219 = vmatprep.subr.bf16.mxu0 %v332_v0  ;;  %235 = vmatprep.mubr.msk.bf16.mxu0 %vm333_vm0, %v332_v0  ;;  %v248_v3 = vld [vmem:[#allocation5 + $0x10] sm:$0xff]   ;;  %v249_v4 = vld [vmem:[#allocation5 + $0x18] sm:$0xff]   ;;  %v250_v5 = vld [vmem:[#allocation5 + $0x20] sm:$0xff]   ;;  %s334_s11 = smov [#allocation7]  }
  0x28   :  { %220 = vmatpush3.bf16.msra.mxu0 %v246_v1  ;;  %v251_v6 = vld [vmem:[#allocation5 + $0x28] sm:$0xff]   ;;  %v252_v7 = vld [vmem:[#allocation5 + $0x30] sm:$0xff]   ;;  %v253_v8 = vld [vmem:[#allocation5 + $0x38] sm:$0xff]   ;;  %v175_v34 = vshrl.u32 %v174_v33, 7  ;;  %s192_s12 = sshll.u32 %s334_s11, 4  ;;  %s193_s12 = int_to_ptr.vmem [resolvable:$true] %s192_s12 }
  0x29   :  { %221 = vmatprep.subr.bf16.mxu0 %v332_v0  ;;  %v42_v9 = vld [vmem:[#allocation2] sm:$0xf]  ;;  %s300_s13 = scalar_lea.vmem %s193_s12, 128  ;;  %p305_p3 = scmp.lt.s32.totalorder %s193_s12, %s193_s12 }
  0x2a   :  { %v147_v35 = vld [vmem:[%s403_s2] sm:$0x3]  ;;  %v176_v38 = vsub.s32 0, %v175_v34  ;;  %v181_v42 = vsub.s32 1, %v175_v34  ;;  %p301_p2 = scmp.ne.s32.totalorder %s193_s12, %s300_s13  ;;  %p306_p4 = scmp.lt.s32.totalorder %s300_s13, %s300_s13 }
  0x2c   :  { %222 = vmatpush3.bf16.msra.mxu0 %v247_v2  ;;  %p307_p5 = por %p306_p4, %p305_p3 }
  0x2d   :  { %223 = vmatprep.subr.bf16.mxu0 %v332_v0 }
  0x2e   :  { %p308_p6 = pnand %p307_p5, %p301_p2 }
  0x30   :  { %224 = vmatpush3.bf16.msra.mxu0 %v248_v3 }
  0x31   :  { %225 = vmatprep.subr.bf16.mxu0 %v332_v0 }
  0x34   :  { %226 = vmatpush3.bf16.msra.mxu0 %v249_v4 }
  0x35   :  { %227 = vmatprep.subr.bf16.mxu0 %v332_v0 }
  0x38   :  { %228 = vmatpush3.bf16.msra.mxu0 %v250_v5 }
  0x39   :  { %229 = vmatprep.subr.bf16.mxu0 %v332_v0 }
  0x3c   :  { %230 = vmatpush3.bf16.msra.mxu0 %v251_v6 }
  0x3d   :  { %231 = vmatprep.subr.bf16.mxu0 %v332_v0 }
  0x40   :  { %232 = vmatpush3.bf16.msra.mxu0 %v252_v7 }
  0x41   :  { %233 = vmatprep.subr.bf16.mxu0 %v332_v0 }
  0x44   :  { %234 = vmatpush3.bf16.msra.mxu0 %v253_v8 }
  0x47   :  { %236 = vmatmul.mubr.bf16.vlgmr.msra.gmra.mrb[0].mxu0 %v42_v9 }
 0x11a   :  { %v141_v10 = vpop.f32.mrb[0].mxu0 }
 0x11b   :  { %v148_v11 = vrot.slane %v141_v10, 4  ;;  %v154_v12 = vmul.f32 %v141_v10, %v141_v10  ;;  %v237_v13 = vpop.f32.mrb[1].mxu0 }
 0x11c   :  { %v144_v14 = vpop.f32.mrb[2].mxu0 }
 0x11d   :  { %v149_v15 = vadd.f32 %v148_v11, %v141_v10  ;;  %v155_v16 = vrot.slane %v154_v12, 4  ;;  %v238_v17 = vpop.f32.mrb[3].mxu0 }
 0x11f   :  { %v150_v18 = vrot.slane %v149_v15, 2  ;;  %v156_v19 = vadd.f32 %v155_v16, %v154_v12 }
 0x121   :  { %v151_v20 = vadd.f32 %v150_v18, %v149_v15  ;;  %v157_v21 = vrot.slane %v156_v19, 2 }
 0x123   :  { %v152_v22 = vrot.slane %v151_v20, 1  ;;  %v158_v23 = vadd.f32 %v157_v21, %v156_v19 }
 0x125   :  { %v153_v24 = vadd.f32 %v152_v22, %v151_v20  ;;  %v159_v25 = vrot.slane %v158_v23, 1 }
 0x127   :  { %v160_v26 = vadd.f32 %v159_v25, %v158_v23  ;;  %v161_v27 = vmul.f32 0.125, %v153_v24 }
 0x129   :  { %v162_v28 = vmul.f32 0.125, %v160_v26  ;;  %v163_v29 = vmul.f32 %v161_v27, %v161_v27 }
 0x12b   :  { %v164_v30 = vsub.f32 %v162_v28, %v163_v29 }
 0x12d   :  { %v165_v31 = vmax.f32 %v164_v30, 0.0 }
 0x12f   :  { %v166_v32 = vadd.f32 1e-05, %v165_v31 }
 0x131   :  { %254 = vrsqrt.f32 %v166_v32 }
 0x13b   :  { %v255_v36 = vpop.eup %254 }
 0x13c   :  { %v168_v37 = vmul.f32 %v255_v36, %v147_v35 }
 0x13e   :  { %v169_v39 = vmul.f32 %v168_v37, %v161_v27  ;;  %v177_v40 = vrot.slane %v168_v37, %v176_v38 }
 0x140   :  { %v171_v41 = vrot.slane %v169_v39, 7  ;;  %v178_v44 = vmul.f32 %v177_v40, %v141_v10 }
 0x142   :  { %v173_v43 = vsub.f32 %v147_v35, %v171_v41 }
 0x144   :  { %v182_v45 = vrot.slane %v173_v43, %v181_v42 }
 0x146   :  { %v183_v46 = vadd.f32 %v182_v45, %v178_v44 }
 0x148   :  { %v184_v47 = vmax.f32 %v183_v46, 0.0 }
 0x14a   :  { %185 = vst [vmem:[#allocation7] sm:$0xff] %v184_v47 }
 0x14b   :  { %311 = shalt.err (!%p308_p6)
}
 0x14c   :  { %s312_s15 = scalar_lea.hbm %s404_s3, 128 }
 0x14d   :  { %p313_p7 = scmp.ne.s32.totalorder %s404_s3, %s312_s15  ;;  %p316_p8 = scmp.lt.u32.totalorder %s312_s15, %s404_s3 }
 0x14f   :  { %p318_p9 = pnand %p316_p8, %p313_p7 }
 0x151   :  { %321 = shalt.err (!%p318_p9)
}
 0x152   :  { %195 = dma.vmem_to_hbm [thread:$0]  %s193_s12, 128, %s404_s3, [#allocation4]  }
 0x153   :  { %326 = dma.done.wait [#allocation4], 128  }
 0x154   :  { %327 = vsyncadd [#allocation4], 4294967168 }
 0x155   :  { %199 = vsyncpa [#allocation3], 1 }
 0x156   :  { %200 = vsyncpa [#allocation6], 1 }
 0x157   :  { %201 = vsyncpa [#allocation4], 1 }

</bundles_post_ra>
